<compile_context>
chip_gen: v7x
topology: tpu7x:2x2x1
jax: 0.10.0
libtpu: 0.0.40
codegen_flags: <defaults>
</compile_context>

<pallas_src>
import jax
import jax.numpy as jnp
from jax.experimental import pallas as pl
from jax.experimental.pallas import tpu as pltpu


def _char_embedding_kernel(idx_ref, tbl_ref, out_ref):
    """One tile of token *pairs*: embedding gather as one-hot matmuls.

    idx_ref : (TILE2, 2)   int32  two char indices per row (tokens 2i, 2i+1)
    tbl_ref : (Vp, D)      f32    vocab-padded embedding table (row 0 == zeros)
    out_ref : (TILE2, 2*D)        [emb(token 2i) | emb(token 2i+1)] per row
    """
    tile2 = idx_ref.shape[0]
    vocab = tbl_ref.shape[0]

    tbl = tbl_ref[...]                                           # (Vp, D)
    idx = idx_ref[...]                                           # (TILE2, 2)
    idx_a = idx[:, 0:1]                                          # (TILE2, 1)
    idx_b = idx[:, 1:2]                                          # (TILE2, 1)

    vocab_iota = jax.lax.broadcasted_iota(jnp.int32, (tile2, vocab), 1)

    # one-hot(idx) @ table  -> exact row gather on the MXU.
    # precision=HIGHEST keeps the f32 path bit-exact (multi-pass MXU).
    onehot_a = (idx_a == vocab_iota).astype(tbl.dtype)           # (TILE2, Vp)
    onehot_b = (idx_b == vocab_iota).astype(tbl.dtype)           # (TILE2, Vp)
    emb_a = jnp.dot(onehot_a, tbl,
                    preferred_element_type=jnp.float32,
                    precision=jax.lax.Precision.HIGHEST)         # (TILE2, D)
    emb_b = jnp.dot(onehot_b, tbl,
                    preferred_element_type=jnp.float32,
                    precision=jax.lax.Precision.HIGHEST)         # (TILE2, D)

    # Lane-dense store: two tokens per row -> 2*D lanes (128 for D=64).
    out_ref[...] = jnp.concatenate([emb_a, emb_b], axis=-1).astype(out_ref.dtype)


def char_embedding_forward(x, emb_table, *, tile_tokens=None, out_dtype=None,
                           use_pallas=None):
    """Pallas equivalent of CharEmbedding.forward -> (x_emb, mask).

    Contract: padding_idx == 0, so callers should keep row 0 of `emb_table`
    zero (as nn.Embedding(padding_idx=0) does). Indices must lie in [0, V);
    out-of-range indices silently produce zero embeddings (mask still 1).
    """
    B, S, W = x.shape
    V, D = emb_table.shape
    N = B * S * W
    out_dtype = emb_table.dtype if out_dtype is None else out_dtype

    # compute_mask(x, padding_idx=0) == (x != 0).float() -- trivial elementwise
    # op, fused by XLA; keeping it out of the kernel avoids lane-width-1 stores.
    mask = (x != 0).astype(jnp.float32)

    # Tiny-problem fast path: a couple of grid steps cannot amortize the
    # pallas_call / pipeline overhead, the fused XLA gather wins.
    if use_pallas is None:
        use_pallas = N >= 4096
    if not use_pallas:
        return emb_table[x].astype(out_dtype), mask

    # Tile selection: big tiles for the mem-bound writeback, but keep >= 4 grid
    # steps when possible so the parallel grid axis feeds both v7x TensorCores.
    if tile_tokens is None:
        tile_tokens = 1024
        while tile_tokens > 128 and pl.cdiv(N, tile_tokens) < 4:
            tile_tokens //= 2
    # Two tokens per output row + (8,128) sublane rule -> multiple of 16 tokens.
    tile_tokens = max(16, (tile_tokens // 16) * 16)

    # Flatten tokens and pad up to a tile multiple (pad index 0 -> zero row of
    # the table and mask 0; padded rows are sliced off afterwards).
    idx_flat = x.astype(jnp.int32).reshape(-1)
    n_pad = (-N) % tile_tokens
    if n_pad:
        idx_flat = jnp.concatenate([idx_flat, jnp.zeros((n_pad,), jnp.int32)])
    Np = N + n_pad
    Np2 = Np // 2
    tile2 = tile_tokens // 2
    idx_pairs = idx_flat.reshape(Np2, 2)

    # Pad vocab to a multiple of 128 (zero rows): whole-vreg one-hot lanes and
    # full MXU K columns, layout independent of the actual char vocab size.
    tbl = emb_table.astype(jnp.float32)
    Vp = ((V + 127) // 128) * 128
    if Vp != V:
        tbl = jnp.concatenate([tbl, jnp.zeros((Vp - V, D), tbl.dtype)], axis=0)

    grid_spec = pltpu.PrefetchScalarGridSpec(
        num_scalar_prefetch=0,
        grid=(Np2 // tile2,),
        in_specs=[
            pl.BlockSpec((tile2, 2), lambda i: (i, 0)),       # paired indices
            pl.BlockSpec((Vp, D), lambda i: (0, 0)),          # full table
        ],
        out_specs=pl.BlockSpec((tile2, 2 * D), lambda i: (i, 0)),
    )

    emb_pairs = pl.pallas_call(
        _char_embedding_kernel,
        grid_spec=grid_spec,
        out_shape=jax.ShapeDtypeStruct((Np2, 2 * D), out_dtype),
        compiler_params=pltpu.CompilerParams(
            dimension_semantics=("parallel",)),    # token tiles are independent
    )(idx_pairs, tbl)

    # (Np2, 2*D) row-major is exactly (Np, D) row-major -> free reshape back.
    x_emb = emb_pairs.reshape(Np, D)[:N].reshape(B, S, W, D)
    return x_emb, mask


def char_embedding_ref(x, emb_table):
    """Pure-JAX reference mirroring the PyTorch forward."""
    x_emb = emb_table[x]                                    # (B, S, W, D)
    mask = (x != 0).astype(jnp.float32)                     # (B, S, W)
    return x_emb, mask


if __name__ == "__main__":
    # small shapes consistent with the module
    B, S, W = 2, 8, 16          # batch, seq_len, word_len
    V, D = 96, 64               # char_dict_size (stand-in for h5 attr), embedding_size

    key = jax.random.PRNGKey(0)
    k_idx, k_tbl = jax.random.split(key)

    # char indices with explicit trailing padding (index 0) per word
    x = jax.random.randint(k_idx, (B, S, W), 0, V, dtype=jnp.int32)
    x = x.at[:, :, W - 4:].set(0)

    # random embedding table; padding_idx=0 -> row 0 is zeros (as nn.Embedding does)
    emb_table = jax.random.normal(k_tbl, (V, D), jnp.float32)
    emb_table = emb_table.at[0].set(0.0)

    # force the Pallas path (auto-dispatch would use plain XLA at this tiny N)
    x_emb, mask = char_embedding_forward(x, emb_table, use_pallas=True)
    jax.block_until_ready((x_emb, mask))

    x_emb_ref, mask_ref = char_embedding_ref(x, emb_table)
    jax.block_until_ready((x_emb_ref, mask_ref))

    assert x_emb.shape == (B, S, W, D) and mask.shape == (B, S, W)
    assert jnp.allclose(x_emb, x_emb_ref, atol=1e-6, rtol=1e-6), \
        float(jnp.max(jnp.abs(x_emb - x_emb_ref)))
    assert jnp.allclose(mask, mask_ref)
    print("KERNEL_OK")
</pallas_src>

<mosaic_0001>
module attributes {stable_mosaic.version = 11 : i64} {
  func.func @_char_embedding_kernel(%arg0: i32, %arg1: memref<64x2xi32, #tpu.memory_space<vmem>>, %arg2: memref<128x64xf32, #tpu.memory_space<vmem>>, %arg3: memref<64x128xf32, #tpu.memory_space<vmem>>) attributes {dimension_semantics = [#tpu.dimension_semantics<parallel>], iteration_bounds = array<i64: 2>, scalar_prefetch = 0 : i64, scratch_operands = 0 : i64, tpu.core_type = #tpu.core_type<tc>, window_params = [{transform_indices = @transform_0, window_bounds = array<i64: 64, 2>}, {pipeline_mode = #tpu.pipeline_mode<synchronous>, transform_indices = @transform_1, window_bounds = array<i64: 128, 64>}, {transform_indices = @transform_2, window_bounds = array<i64: 64, 128>}]} {
    %c0 = arith.constant 0 : index
    %c0_0 = arith.constant 0 : index
    %0 = vector.load %arg2[%c0, %c0_0] : memref<128x64xf32, #tpu.memory_space<vmem>>, vector<128x64xf32>
    %c0_1 = arith.constant 0 : index
    %c0_2 = arith.constant 0 : index
    %1 = vector.load %arg1[%c0_1, %c0_2] : memref<64x2xi32, #tpu.memory_space<vmem>>, vector<64x2xi32>
    %2 = vector.extract_strided_slice %1 {offsets = [0, 0], sizes = [64, 1], strides = [1, 1]} : vector<64x2xi32> to vector<64x1xi32>
    %3 = vector.extract_strided_slice %1 {offsets = [0, 1], sizes = [64, 1], strides = [1, 1]} : vector<64x2xi32> to vector<64x1xi32>
    %4 = tpu.iota {dimensions = array<i32: 1>} : vector<64x128xi32>
    %5 = vector.broadcast %2 : vector<64x1xi32> to vector<64x128xi32>
    %6 = arith.cmpi eq, %5, %4 : vector<64x128xi32>
    %7 = arith.extui %6 : vector<64x128xi1> to vector<64x128xi32>
    %8 = arith.sitofp %7 : vector<64x128xi32> to vector<64x128xf32>
    %9 = vector.broadcast %3 : vector<64x1xi32> to vector<64x128xi32>
    %10 = arith.cmpi eq, %9, %4 : vector<64x128xi32>
    %11 = arith.extui %10 : vector<64x128xi1> to vector<64x128xi32>
    %12 = arith.sitofp %11 : vector<64x128xi32> to vector<64x128xf32>
    %cst = arith.constant dense<0.000000e+00> : vector<64x64xf32>
    %13 = tpu.matmul %8, %0, %cst {dimension_numbers = #tpu.dot_dimension_numbers<[1], [0], [0], [1], [0, 0, 1, 1], [], []>, precision = #tpu.contract_precision<fp32>} : vector<64x128xf32>, vector<128x64xf32>, vector<64x64xf32> -> vector<64x64xf32>
    %cst_3 = arith.constant dense<0.000000e+00> : vector<64x64xf32>
    %14 = tpu.matmul %12, %0, %cst_3 {dimension_numbers = #tpu.dot_dimension_numbers<[1], [0], [0], [1], [0, 0, 1, 1], [], []>, precision = #tpu.contract_precision<fp32>} : vector<64x128xf32>, vector<128x64xf32>, vector<64x64xf32> -> vector<64x64xf32>
    %15 = tpu.concatenate %13, %14 in 1 : vector<64x64xf32>, vector<64x64xf32> -> vector<64x128xf32>
    %c0_4 = arith.constant 0 : index
    %c0_5 = arith.constant 0 : index
    %16 = vector.load %arg3[%c0_4, %c0_5] : memref<64x128xf32, #tpu.memory_space<vmem>>, vector<64x128xf32>
    tpu.vector_store %arg3[%c0_4, %c0_5], %15 {strides = array<i32>} : memref<64x128xf32, #tpu.memory_space<vmem>>, vector<64x128xf32>,
    return
  }
  func.func @transform_0(%arg0: i32) -> (i32, i32) {
    %c0_i32 = arith.constant 0 : i32
    %c0_i32_0 = arith.constant 0 : i32
    return %arg0, %c0_i32 : i32, i32
  }
  func.func @transform_1(%arg0: i32) -> (i32, i32) {
    %c0_i32 = arith.constant 0 : i32
    %c0_i32_0 = arith.constant 0 : i32
    %c0_i32_1 = arith.constant 0 : i32
    return %c0_i32, %c0_i32_0 : i32, i32
  }
  func.func @transform_2(%arg0: i32) -> (i32, i32) {
    %c0_i32 = arith.constant 0 : i32
    %c0_i32_0 = arith.constant 0 : i32
    return %arg0, %c0_i32 : i32, i32
  }
}

</mosaic_0001>

<bundles_post_ra>
// kernel: tpu_custom_call.1
= control target key start
LH: loop header
LB: loop body
LE: loop exit
PB: predicated region body
PF: predicated region fallthrough
CT: control target
= control target key end

     0   :  { %7 = vsyncpa [#allocation3], 0  ;;  %s4896_s0 = inlined_call_operand.vmem [shape: s32[128,2], index: 0, kind: input, shape index: {}]   ;;  %s4897_s1 = inlined_call_operand.vmem [shape: f32[128,64], index: 1, kind: input, shape index: {}]   ;;  %s4898_s2 = inlined_call_operand.hbm [shape: f32[128,128], index: 2, kind: output, shape index: {}]  }
   0x1   :  { %9 = vsyncpa [#allocation3 + $0x1], 0  ;;  %s3771_s9 = smov 0   ;;  %s3773_s10 = smov 0  }
   0x2   :  { %s3775_s11 = smov 0   ;;  %s3777_s12 = smov 0  }
   0x3 LB: > { %s3792_s13 = sadd.s32 4294967295, %s3746_s12   ;;  %s2276_s14 = sadd.s32 4294967294, %s3746_s12   ;;  %s3746_s12 = sphi %s3777_s12, %s5030_s12   ;;  %s3742_s11 = sphi %s3775_s11, %s5029_s11   ;;  %s3738_s10 = sphi %s3773_s10, %s5028_s10   ;;  %s3734_s9 = sphi %s3771_s9, %s5027_s9  }
   0x4   : > { %s3796_s15 = sadd.s32 1, %s3746_s12   ;;  %s69_s16 = sadd.s32 1, %s3742_s11 }
   0x5   : > { %s66_s17 = ssub.s32 %s3746_s12, %s3796_s15  ;;  %p79_p0 = scmp.ne.s32.totalorder %s3742_s11, %s3738_s10 }
   0x6   : > { %p67_p1 = scmp.eq.s32.totalorder %s66_s17, 0  ;;  %p80_p2 = scmp.eq.s32.totalorder %s3792_s13, 1 }
   0x7   : > { %p85_p3 = scmp.ne.s32.totalorder %s3738_s10, %s3734_s9  ;;  %p86_p4 = scmp.eq.s32.totalorder %s2276_s14, 1 }
   0x8   : > { %s3807_s18 = scalar_select %p67_p1, %s3742_s11, %s69_s16  }
   0x9   : > { %p3809_p5 = por %p80_p2, %p79_p0  ;;  %p3813_p6 = por %p86_p4, %p85_p3 }
   0xa   : > { %p2279_p7 = scmp.ge.s32.totalorder %s3746_s12, 1  ;;  %p116_p8 = scmp.lt.s32.totalorder %s3746_s12, 3 }
   0xc   : > { %p117_p9 = pnand %p2279_p7, %p116_p8 }
   0xe   : > { %120 = sbr.rel (%p117_p9) target bundleno = 687 (0x2af), region = 28 }
  0x15   : > { %s2281_s21 = sshll.u32 %s3792_s13, 3  ;;  %v145_v0 = vld [vmem:[%s4897_s1] sm:$0xff]  ;;  %v146_v1 = vld [vmem:[%s4897_s1 + $0x8] sm:$0xff]  ;;  %v3829_v2 = vld [vmem:[%s4897_s1 + $0x10] sm:$0xff]  ;;  %v3748_v3 = vmov 1   ;;  %s3752_s17 = smov 64  }
  0x16   : > { %3679 = vset.pattern.permute.xlu0 %v3748_v3  ;;  %3680 = vset.pattern.permute.xlu1 %v3748_v3  ;;  %p139_p10 = scmp.lt.s32.totalorder %s2281_s21, 15  ;;  %v268_v4 = vand.u32 4294901760, %v145_v0  ;;  %v271_v5 = vand.u32 4294901760, %v146_v1  ;;  %v148_v6 = vld [vmem:[%s4897_s1 + $0x18] sm:$0xff]  ;;  %v274_v7 = vand.u32 4294901760, %v3829_v2  ;;  %v3840_v8 = vld [vmem:[%s4897_s1 + $0x20] sm:$0xff] }
  0x17   : > { %v277_v9 = vand.u32 4294901760, %v148_v6  ;;  %v3845_v10 = vld [vmem:[%s4897_s1 + $0x28] sm:$0xff]  ;;  %v280_v12 = vand.u32 4294901760, %v3840_v8  ;;  %v3856_v15 = vld [vmem:[%s4897_s1 + $0x30] sm:$0xff]  ;;  %v3861_v16 = vld [vmem:[%s4897_s1 + $0x38] sm:$0xff]  ;;  %s135_s22 = sand.u32 1, %s3738_s10  }
  0x18   : > { %s5032_s21 = smov (!%p139_p10, %s2281_s21), 15  ;;  %v3847_v11 = vpack.c.bf16 %v271_v5, %v268_v4  ;;  %v283_v13 = vand.u32 4294901760, %v3845_v10  ;;  %v286_v20 = vand.u32 4294901760, %v3856_v15  ;;  %v289_v21 = vand.u32 4294901760, %v3861_v16  ;;  %v3893_v22 = vld [vmem:[%s4897_s1 + $0x40] sm:$0xff]  ;;  %v3898_v23 = vld [vmem:[%s4897_s1 + $0x48] sm:$0xff] }
  0x19   : > { %v3851_v14 = vpack.c.bf16 %v277_v9, %v274_v7  ;;  %s2282_s16 = sshll.u32 %s5032_s21, 3  ;;  %v292_v27 = vand.u32 4294901760, %v3893_v22  ;;  %v295_v28 = vand.u32 4294901760, %v3898_v23  ;;  %v3920_v29 = vld [vmem:[%s4897_s1 + $0x50] sm:$0xff]  ;;  %v3928_v30 = vld [vmem:[%s4897_s1 + $0x58] sm:$0xff]  ;;  %v3942_v34 = vld [vmem:[%s4897_s1 + $0x60] sm:$0xff]  ;;  %v3958_v38 = vsub.f32 %v145_v0, %v268_v4 }
  0x1a   : > { %3362 = vmatprep.subr.bf16.mxu1 %v3847_v11  ;;  %3170 = vmatprep.subr.bf16.mxu0 %v3847_v11  ;;  %s3868_s23 = scalar_lea.vmem %s4896_s0, %s2282_s16  ;;  %v3883_v19 = vpack.c.bf16 %v283_v13, %v280_v12  ;;  %v3913_v26 = vpack.c.bf16 %v289_v21, %v286_v20  ;;  %v298_v33 = vand.u32 4294901760, %v3920_v29  ;;  %v3947_v35 = vld [vmem:[%s4897_s1 + $0x68] sm:$0xff]  ;;  %v301_v37 = vand.u32 4294901760, %v3928_v30  ;;  %v3991_v49 = vld [vmem:[%s4897_s1 + $0x70] sm:$0xff]  ;;  %v3996_v50 = vld [vmem:[%s4897_s1 + $0x78] sm:$0xff]  ;;  %s2352_s24 = sshll.u32 %s3792_s13, 10 }
  0x1b   : > { %3364 = vmatpush3.bf16.msra.mxu1 %v3847_v11  ;;  %3172 = vmatpush3.bf16.msra.mxu0 %v3847_v11  ;;  %v3873_v17 = vld [vmem:[%s3868_s23] sm:$0xff]  ;;  %v3876_v18 = vld [vmem:[%s3868_s23 + $0x10] sm:$0xff]  ;;  %v3901_v24 = vld [vmem:[%s3868_s23 + $0x8] sm:$0xff]  ;;  %v3954_v36 = vpack.c.bf16 %v295_v28, %v292_v27  ;;  %4954 = vst [vmem:[#allocation5_spill] sm:$0xff] %v3958_v38  ;;  %v3960_v39 = vsub.f32 %v146_v1, %v271_v5  ;;  %v304_v44 = vand.u32 4294901760, %v3942_v34  ;;  %v307_v45 = vand.u32 4294901760, %v3947_v35  ;;  %s4847_s28 = scalar_lea.hbm %s4898_s2, %s2352_s24 }
  0x1c   : > { %3366 = vmatprep.subr.bf16.mxu1 %v3851_v14  ;;  %3174 = vmatprep.subr.bf16.mxu0 %v3851_v14  ;;  %v3904_v25 = vld [vmem:[%s3868_s23 + $0x18] sm:$0xff]  ;;  %v3931_v31 = vld [vmem:[%s3868_s23 + $0x20] sm:$0xff]  ;;  %v3934_v32 = vld [vmem:[%s3868_s23 + $0x28] sm:$0xff]  ;;  %v3965_v40 = vsub.f32 %v3829_v2, %v274_v7  ;;  %v3967_v41 = vsub.f32 %v148_v6, %v277_v9  ;;  %v3986_v48 = vpack.c.bf16 %v301_v37, %v298_v33  ;;  %v4915_v51 = vand.u32 4294901760, %v3958_v38  ;;  %s4855_s13 = scalar_lea.sflag [#allocation3], %s135_s22  ;;  %s3753_s30 = smov [#allocation2]  }
  0x1d   : > { %220 = vperm.xlu0 %3679, %v3873_v17   ;;  %226 = vperm.xlu1 %3680, %v3876_v18   ;;  %4955 = vst [vmem:[#allocation6_spill] sm:$0xff] %v3960_v39  ;;  %v3970_v42 = vld [vmem:[%s3868_s23 + $0x30] sm:$0xff]  ;;  %v3973_v43 = vld [vmem:[%s3868_s23 + $0x38] sm:$0xff]  ;;  %v4914_v52 = vand.u32 4294901760, %v3960_v39  ;;  %v4013_v55 = vpack.c.bf16 %v307_v45, %v304_v44  ;;  %v4018_v56 = vsub.f32 %v3840_v8, %v280_v12  ;;  %v310_v58 = vand.u32 4294901760, %v3991_v49  ;;  %s2280_s23 = sshll.u32 %s135_s22, 6 }
  0x1e   : > { %4956 = vst [vmem:[#allocation7_spill] sm:$0xff] %v3965_v40  ;;  %4957 = vst [vmem:[#allocation8_spill] sm:$0xff] %v3967_v41  ;;  %v4913_v46 = vand.u32 4294901760, %v3965_v40  ;;  %v4912_v47 = vand.u32 4294901760, %v3967_v41  ;;  %v4023_v57 = vsub.f32 %v3845_v10, %v283_v13  ;;  %v313_v59 = vand.u32 4294901760, %v3996_v50  ;;  %s137_s21 = scalar_lea.vmem [#allocation2], %s2280_s23 }
  0x1f   : > { %3368 = vmatpush3.bf16.msra.mxu1 %v3851_v14  ;;  %3176 = vmatpush3.bf16.msra.mxu0 %v3851_v14  ;;  %4958 = vst [vmem:[#allocation9_spill] sm:$0xff] %v4013_v55  ;;  %4959 = vst [vmem:[#allocation10_spill] sm:$0xff] %v4018_v56  ;;  %v432_v62 = vsub.f32 %v3958_v38, %v4915_v51  ;;  %v439_v63 = vsub.f32 %v3960_v39, %v4914_v52  ;;  %v4910_v0 = vand.u32 4294901760, %v4018_v56  ;;  %v3749_v2 = vmov 0   ;;  %s2214_s25 = sshll.u32 %s137_s21, 4  ;;  %s3688_s3 = sshll.u32 %s3753_s30, 4  ;;  %s4849_s25 = int_to_ptr.vmem [resolvable:$true] %s2214_s25  ;;  %s3689_s3 = int_to_ptr.vmem [resolvable:$false] %s3688_s3 }
  0x20   : > { %3370 = vmatprep.subr.bf16.mxu1 %v3883_v19  ;;  %3178 = vmatprep.subr.bf16.mxu0 %v3883_v19  ;;  %v446_v53 = vsub.f32 %v3965_v40, %v4913_v46  ;;  %v453_v54 = vsub.f32 %v3967_v41, %v4912_v47  ;;  %4960 = vst [vmem:[#allocation11_spill] sm:$0xff] %v4023_v57  ;;  %v4909_v1 = vand.u32 4294901760, %v4023_v57  ;;  %s3684_s29 = scalar_lea.vmem %s4849_s25, 1024  ;;  %s3690_s4 = scalar_lea.vmem %s3689_s3, 2048 }
  0x21   : > { %223 = vperm.xlu0 %3679, %v3901_v24   ;;  %229 = vperm.xlu1 %3680, %v3904_v25   ;;  %v4044_v5 = vsub.f32 %v3856_v15, %v286_v20  ;;  %v4049_v6 = vsub.f32 %v3861_v16, %v289_v21  ;;  %v460_v7 = vsub.f32 %v4018_v56, %v4910_v0  ;;  %v433_v13 = vand.u32 4294901760, %v432_v62  ;;  %p3685_p11 = scmp.ne.s32.totalorder %s4849_s25, %s3684_s29  ;;  %p3691_p0 = scmp.lt.s32.totalorder %s4849_s25, %s3689_s3 }
  0x22   : > { %v447_v60 = vand.u32 4294901760, %v446_v53  ;;  %v454_v61 = vand.u32 4294901760, %v453_v54  ;;  %v467_v8 = vsub.f32 %v4023_v57, %v4909_v1  ;;  %v4064_v9 = vpack.c.bf16 %v313_v59, %v310_v58  ;;  %p3692_p1 = scmp.lt.s32.totalorder %s3690_s4, %s3684_s29 }
  0x23   : > { %3372 = vmatpush3.bf16.msra.mxu1 %v3883_v19  ;;  %3180 = vmatpush3.bf16.msra.mxu0 %v3883_v19  ;;  %4961 = vst [vmem:[#allocation12_spill] sm:$0xff] %v4044_v5  ;;  %4962 = vst [vmem:[#allocation13_spill] sm:$0xff] %v4049_v6  ;;  %v4908_v10 = vand.u32 4294901760, %v4044_v5  ;;  %v4907_v12 = vand.u32 4294901760, %v4049_v6  ;;  %v440_v15 = vand.u32 4294901760, %v439_v63  ;;  %v461_v16 = vand.u32 4294901760, %v460_v7  ;;  %p3686_p12 = pnand %p3685_p11, %p3809_p5 }
  0x24   : > { %3374 = vmatprep.subr.bf16.mxu1 %v3913_v26  ;;  %3182 = vmatprep.subr.bf16.mxu0 %v3913_v26  ;;  %v4039_v4 = vpack.c.bf16 %v454_v61, %v447_v60  ;;  %4963 = vst [vmem:[#allocation14_spill] sm:$0xff] %v4064_v9  ;;  %v4085_v53 = vsub.f32 %v3898_v23, %v295_v28  ;;  %p3693_p2 = por %p3692_p1, %p3691_p0 }
  0x25   : > { %232 = vperm.xlu0 %3679, %v3931_v31   ;;  %235 = vperm.xlu1 %3680, %v3934_v32   ;;  %v474_v20 = vsub.f32 %v4044_v5, %v4908_v10  ;;  %v481_v21 = vsub.f32 %v4049_v6, %v4907_v12  ;;  %v4096_v23 = vpack.c.bf16 %v440_v15, %v433_v13  ;;  %p3687_p13 = pneg %p3686_p12 }
  0x26   : > { %4965 = vst [vmem:[#allocation16_spill] sm:$0xff] %v4085_v53  ;;  %v4110_v62 = vsub.f32 %v3920_v29, %v298_v33  ;;  %v4117_v63 = vsub.f32 %v3928_v30, %v301_v37  ;;  %v4138_v33 = vsub.f32 %v3947_v35, %v307_v45 }
  0x27   : > { %3376 = vmatpush3.bf16.msra.mxu1 %v3913_v26  ;;  %3184 = vmatpush3.bf16.msra.mxu0 %v3913_v26  ;;  %v475_v60 = vand.u32 4294901760, %v474_v20  ;;  %v482_v61 = vand.u32 4294901760, %v481_v21  ;;  %p3694_p3 = pnand %p3693_p2, %p3687_p13 }
  0x28   : > { %3378 = vmatprep.subr.bf16.mxu1 %v3954_v36  ;;  %3186 = vmatprep.subr.bf16.mxu0 %v3954_v36  ;;  %4966 = vst [vmem:[#allocation17_spill] sm:$0xff] %v4110_v62  ;;  %4967 = vst [vmem:[#allocation18_spill] sm:$0xff] %v4117_v63  ;;  %v4903_v29 = vand.u32 4294901760, %v4117_v63 }
  0x29   : > { %238 = vperm.xlu0 %3679, %v3970_v42   ;;  %241 = vperm.xlu1 %3680, %v3973_v43   ;;  %4969 = vst [vmem:[#allocation20_spill] sm:$0xff] %v4138_v33 }
  0x2a   : > { %v509_v37 = vsub.f32 %v4117_v63, %v4903_v29 }
  0x2b   : > { %3380 = vmatpush3.bf16.msra.mxu1 %v3954_v36  ;;  %3188 = vmatpush3.bf16.msra.mxu0 %v3954_v36 }
  0x2c   : > { %3382 = vmatprep.subr.bf16.mxu1 %v3986_v48  ;;  %3190 = vmatprep.subr.bf16.mxu0 %v3986_v48 }
  0x2d   : > { %3681 = vset.pattern.permute.xlu0 %v3749_v2  ;;  %3682 = vset.pattern.permute.xlu1 %v3749_v2 }
  0x2e   : > { %172 = vperm.xlu0 %3681, %v3873_v17   ;;  %175 = vperm.xlu1 %3682, %v3901_v24   ;;  %v468_v17 = vand.u32 4294901760, %v467_v8  ;;  %v4080_v24 = vsub.f32 %v3893_v22, %v292_v27  ;;  %v4905_v27 = vand.u32 4294901760, %v4085_v53  ;;  %v4904_v8 = vand.u32 4294901760, %v4110_v62 }
  0x2f   : > { %3384 = vmatpush3.bf16.msra.mxu1 %v3986_v48  ;;  %3192 = vmatpush3.bf16.msra.mxu0 %v3986_v48 }
  0x30   : > { %3386 = vmatprep.subr.bf16.mxu1 %v4013_v55  ;;  %3194 = vmatprep.subr.bf16.mxu0 %v4013_v55  ;;  %4964 = vst [vmem:[#allocation15_spill] sm:$0xff] %v4080_v24  ;;  %v4089_v54 = vpack.c.bf16 %v468_v17, %v461_v16  ;;  %v4906_v22 = vand.u32 4294901760, %v4080_v24  ;;  %v495_v28 = vsub.f32 %v4085_v53, %v4905_v27  ;;  %v4901_v16 = vand.u32 4294901760, %v4138_v33 }
  0x31   : > { %v502_v30 = vsub.f32 %v4110_v62, %v4904_v8 }
  0x32   : > { %178 = vperm.xlu1 %3682, %v3876_v18   ;;  %181 = vperm.xlu0 %3681, %v3904_v25   ;;  %v4099_v18 = vpack.c.bf16 %v482_v61, %v475_v60  ;;  %v488_v25 = vsub.f32 %v4080_v24, %v4906_v22  ;;  %v496_v7 = vand.u32 4294901760, %v495_v28  ;;  %v523_v35 = vsub.f32 %v4138_v33, %v4901_v16 }
  0x33   : > { %3388 = vmatpush3.bf16.msra.mxu1 %v4013_v55  ;;  %3196 = vmatpush3.bf16.msra.mxu0 %v4013_v55  ;;  %v503_v13 = vand.u32 4294901760, %v502_v30  ;;  %v4184_v28 = vpack.c.bf16 %v3967_v41, %v3965_v40  ;;  %v4196_v30 = vpack.c.bf16 %v4085_v53, %v4080_v24 }
  0x34   : > { %3390 = vmatprep.subr.bf16.mxu1 %v4064_v9  ;;  %3198 = vmatprep.subr.bf16.mxu0 %v4064_v9  ;;  %v489_v2 = vand.u32 4294901760, %v488_v25  ;;  %v524_v20 = vand.u32 4294901760, %v523_v35 }
  0x36   : > { %184 = vperm.xlu1 %3682, %v3931_v31   ;;  %187 = vperm.xlu0 %3681, %v3934_v32   ;;  %v4125_v31 = vpack.c.bf16 %v496_v7, %v489_v2  ;;  %v4133_v32 = vsub.f32 %v3942_v34, %v304_v44  ;;  %v510_v34 = vand.u32 4294901760, %v509_v37  ;;  %v4188_v2 = vpack.c.bf16 %v4023_v57, %v4018_v56 }
  0x37   : > { %3392 = vmatpush3.bf16.msra.mxu1 %v4064_v9  ;;  %3200 = vmatpush3.bf16.msra.mxu0 %v4064_v9  ;;  %v4192_v7 = vpack.c.bf16 %v4049_v6, %v4044_v5  ;;  %v4200_v37 = vpack.c.bf16 %v4117_v63, %v4110_v62 }
  0x38   : > { %3394 = vmatprep.subr.bf16.mxu1 %v4096_v23  ;;  %3202 = vmatprep.subr.bf16.mxu0 %v4096_v23  ;;  %4968 = vst [vmem:[#allocation19_spill] sm:$0xff] %v4133_v32  ;;  %v4902_v15 = vand.u32 4294901760, %v4133_v32  ;;  %v4163_v45 = vpack.c.bf16 %v510_v34, %v503_v13  ;;  %v4204_v13 = vpack.c.bf16 %v4138_v33, %v4133_v32 }
  0x3a   : > { %190 = vperm.xlu1 %3682, %v3970_v42   ;;  %193 = vperm.xlu0 %3681, %v3973_v43   ;;  %v516_v44 = vsub.f32 %v4133_v32, %v4902_v15  ;;  %v4156_v42 = vsub.f32 %v3991_v49, %v310_v58  ;;  %v4161_v43 = vsub.f32 %v3996_v50, %v313_v59 }
  0x3c   : > { %4970 = vst [vmem:[#allocation21_spill] sm:$0xff] %v4156_v42  ;;  %4971 = vst [vmem:[#allocation22_spill] sm:$0xff] %v4161_v43  ;;  %v517_v17 = vand.u32 4294901760, %v516_v44  ;;  %v4900_v21 = vand.u32 4294901760, %v4156_v42  ;;  %v4899_v60 = vand.u32 4294901760, %v4161_v43  ;;  %v4208_v34 = vpack.c.bf16 %v4161_v43, %v4156_v42 }
  0x3d   : > { %v169_v44 = vlaneseq }
  0x3e   : > { %3683 = vset.pattern.permute.xlu0 %v3748_v3  ;;  %v4168_v61 = vpack.c.bf16 %v524_v20, %v517_v17  ;;  %v530_v49 = vsub.f32 %v4156_v42, %v4900_v21  ;;  %v537_v50 = vsub.f32 %v4161_v43, %v4899_v60  ;;  %v4180_v3 = vpack.c.bf16 %v3960_v39, %v3958_v38 }
  0x3f   : > { %v4210_v35 = vand.u32 127, %v169_v44 }
  0x40   : > { %v531_v58 = vand.u32 4294901760, %v530_v49  ;;  %v538_v59 = vand.u32 4294901760, %v537_v50  ;;  %v4917_v49 = vmov 0.0  }
  0x42   : > { %v4176_v25 = vpack.c.bf16 %v538_v59, %v531_v58 }
  0x9c   : > { %v4212_v17 = vpop.permute.xlu0 %220  ;;  %v4214_v20 = vpop.permute.xlu1 %226 }
  0x9d   : > { %4972 = vst [vmem:[#allocation23_spill] sm:$0xff] %v4212_v17  ;;  %vm243_vm0 = vcmp.eq.s32.totalorder %v4212_v17, %v4210_v35  ;;  %vm245_vm1 = vcmp.eq.s32.totalorder %v4214_v20, %v4210_v35 }
  0x9e   : > { %v2291_v50 = vsel %vm243_vm0, 1.0, %v4917_v49  ;;  %v2293_v58 = vsel %vm245_vm1, 1.0, %v4917_v49 }
  0x9f   : > { %v4228_v59 = vsub.f32 %v2291_v50, %v2291_v50  ;;  %v4230_v44 = vsub.f32 %v2293_v58, %v2293_v58 }
  0xa0   : > { %v4232_v60 = vpop.permute.xlu0 %223  ;;  %v4234_v21 = vpop.permute.xlu1 %229 }
  0xa1   : > { %vm244_vm2 = vcmp.eq.s32.totalorder %v4232_v60, %v4210_v35  ;;  %vm246_vm3 = vcmp.eq.s32.totalorder %v4234_v21, %v4210_v35  ;;  %v4916_v16 = vand.u32 4294901760, %v4228_v59  ;;  %v4911_v15 = vand.u32 4294901760, %v4230_v44 }
  0xa2   : > { %v2292_v50 = vsel %vm244_vm2, 1.0, %v4917_v49  ;;  %v2294_v58 = vsel %vm246_vm3, 1.0, %v4917_v49 }
  0xa3   : > { %v4250_v29 = vsub.f32 %v2292_v50, %v2292_v50  ;;  %v4252_v8 = vsub.f32 %v2294_v58, %v2294_v58  ;;  %v1293_v27 = vsub.f32 %v4228_v59, %v4916_v16  ;;  %v1313_v10 = vsub.f32 %v4230_v44, %v4911_v15 }
  0xa4   : > { %v4257_v22 = vpop.permute.xlu0 %232  ;;  %v4259_v12 = vpop.permute.xlu1 %235 }
  0xa5   : > { %vm247_vm4 = vcmp.eq.s32.totalorder %v4257_v22, %v4210_v35  ;;  %vm248_vm5 = vcmp.eq.s32.totalorder %v4259_v12, %v4210_v35  ;;  %v1294_v50 = vand.u32 4294901760, %v1293_v27  ;;  %v4919_v58 = vand.u32 4294901760, %v4250_v29 }
  0xa6   : > { %v2295_v1 = vsel %vm247_vm4, 1.0, %v4917_v49  ;;  %v2296_v0 = vsel %vm248_vm5, 1.0, %v4917_v49  ;;  %v4920_v15 = vand.u32 4294901760, %v4252_v8  ;;  %v1314_v16 = vand.u32 4294901760, %v1313_v10 }
  0xa7   : > { %v4278_v47 = vsub.f32 %v2295_v1, %v2295_v1  ;;  %v4280_v46 = vsub.f32 %v2296_v0, %v2296_v0  ;;  %2937 = vmatprep.mubr.f32.mxu1 %v1294_v50  ;;  %v1303_v27 = vsub.f32 %v4250_v29, %v4919_v58  ;;  %v4973_v50 = vmov 0.0  }
  0xa8   : > { %v4285_v52 = vpop.permute.xlu0 %238  ;;  %v4287_v51 = vpop.permute.xlu1 %241  ;;  %v1323_v49 = vsub.f32 %v4252_v8, %v4920_v15 }
  0xa9   : > { %vm249_vm6 = vcmp.eq.s32.totalorder %v4285_v52, %v4210_v35  ;;  %vm250_vm7 = vcmp.eq.s32.totalorder %v4287_v51, %v4210_v35  ;;  %v1304_v0 = vand.u32 4294901760, %v1303_v27  ;;  %v4928_v1 = vand.u32 4294901760, %v4278_v47 }
  0xaa   : > { %v2297_v58 = vsel %vm249_vm6, 1.0, %v4973_v50  ;;  %v2298_v10 = vsel %vm250_vm7, 1.0, %v4973_v50  ;;  %v4927_v15 = vand.u32 4294901760, %v4280_v46  ;;  %v1324_v27 = vand.u32 4294901760, %v1323_v49 }
  0xab   : > { %v4306_v43 = vsub.f32 %v2297_v58, %v2297_v58  ;;  %v4308_v42 = vsub.f32 %v2298_v10, %v2298_v10  ;;  %2938 = vmatmul.mubr.f32.vlgmr.msra.gmra.mrb[0].mxu1 %v1304_v0  ;;  %v1333_v33 = vsub.f32 %v4278_v47, %v4928_v1 }
  0xac   : > { %3396 = vmatpush3.bf16.msra.mxu1 %v4096_v23  ;;  %2940 = vmatprep.mubr.f32.mxu1 %v1314_v16  ;;  %v1343_v32 = vsub.f32 %v4280_v46, %v4927_v15 }
  0xad   : > { %v4317_v63 = vpop.permute.xlu0 %172  ;;  %v4319_v62 = vpop.permute.xlu1 %175  ;;  %3398 = vmatprep.subr.bf16.mxu1 %v4039_v4  ;;  %v1334_v58 = vand.u32 4294901760, %v1333_v33  ;;  %v4932_v49 = vand.u32 4294901760, %v4306_v43  ;;  %v4934_v0 = vand.u32 4294901760, %v4308_v42 }
  0xae   : > { %vm195_vm8 = vcmp.eq.s32.totalorder %v4317_v63, %v4210_v35  ;;  %vm196_vm9 = vcmp.eq.s32.totalorder %v4319_v62, %v4210_v35  ;;  %v1344_v16 = vand.u32 4294901760, %v1343_v32 }
  0xaf   : > { %v2283_v10 = vsel %vm195_vm8, 1.0, %v4973_v50  ;;  %v2284_v33 = vsel %vm196_vm9, 1.0, %v4973_v50  ;;  %2941 = vmatmul.mubr.f32.gmra.mrb[2].mxu1 %v1324_v27  ;;  %v1353_v15 = vsub.f32 %v4306_v43, %v4932_v49  ;;  %v1363_v1 = vsub.f32 %v4308_v42, %v4934_v0 }
  0xb0   : > { %v4342_v32 = vsub.f32 %v2283_v10, %v2283_v10  ;;  %v4344_v53 = vsub.f32 %v2284_v33, %v2284_v33  ;;  %3400 = vmatpush3.bf16.msra.mxu1 %v4039_v4  ;;  %2943 = vmatprep.mubr.f32.mxu1 %v1334_v58 }
  0xb1   : > { %3402 = vmatprep.subr.bf16.mxu1 %v4089_v54  ;;  %v1354_v24 = vand.u32 4294901760, %v1353_v15  ;;  %v4348_v6 = vpop.permute.xlu1 %178  ;;  %v4350_v27 = vpop.permute.xlu0 %181  ;;  %v1364_v10 = vand.u32 4294901760, %v1363_v1 }
  0xb2   : > { %v4939_v49 = vand.u32 4294901760, %v4342_v32  ;;  %v4938_v5 = vand.u32 4294901760, %v4344_v53  ;;  %vm197_vm10 = vcmp.eq.s32.totalorder %v4348_v6, %v4210_v35  ;;  %vm198_vm11 = vcmp.eq.s32.totalorder %v4350_v27, %v4210_v35 }
  0xb3   : > { %2944 = vmatmul.mubr.f32.gmra.mrb[4].mxu1 %v1344_v16  ;;  %v2285_v15 = vsel %vm197_vm10, 1.0, %v4973_v50  ;;  %v2286_v58 = vsel %vm198_vm11, 1.0, %v4973_v50 }
  0xb4   : > { %3404 = vmatpush3.bf16.msra.mxu1 %v4089_v54  ;;  %2946 = vmatprep.mubr.f32.mxu1 %v1354_v24  ;;  %v351_v33 = vsub.f32 %v4342_v32, %v4939_v49  ;;  %v361_v1 = vsub.f32 %v4344_v53, %v4938_v5  ;;  %v4373_v16 = vsub.f32 %v2285_v15, %v2285_v15  ;;  %v4943_v49 = vmov 1.0  }
  0xb5   : > { %3406 = vmatprep.subr.bf16.mxu1 %v4099_v18  ;;  %v4376_v0 = vsub.f32 %v2286_v58, %v2286_v58  ;;  %v4378_v57 = vpop.permute.xlu1 %184  ;;  %v4380_v56 = vpop.permute.xlu0 %187 }
  0xb6   : > { %v352_v41 = vand.u32 4294901760, %v351_v33  ;;  %v362_v24 = vand.u32 4294901760, %v361_v1  ;;  %vm199_vm12 = vcmp.eq.s32.totalorder %v4378_v57, %v4210_v35  ;;  %vm200_vm13 = vcmp.eq.s32.totalorder %v4380_v56, %v4210_v35 }
  0xb7   : > { %2947 = vmatmul.mubr.f32.gmra.mrb[6].mxu1 %v1364_v10  ;;  %v2287_v15 = vsel %vm199_vm12, 1.0, %v4973_v50  ;;  %v2288_v58 = vsel %vm200_vm13, 1.0, %v4973_v50  ;;  %v4942_v33 = vand.u32 4294901760, %v4373_v16 }
  0xb8   : > { %3408 = vmatpush3.bf16.msra.mxu1 %v4099_v18  ;;  %2673 = vmatprep.mubr.f32.mxu0 %v352_v41  ;;  %v4397_v5 = vsub.f32 %v2287_v15, %v2287_v15  ;;  %v4399_v10 = vsub.f32 %v2288_v58, %v2288_v58  ;;  %v4974_v41 = vand.u32 4294901760, %v4376_v0 }
  0xb9   : > { %2981 = vmatprep.mubr.msk.f32.mxu1 %vm243_vm0, %v4943_v49  ;;  %2674 = vmatmul.mubr.f32.vlgmr.msra.gmra.mrb[0].mxu0 %v362_v24  ;;  %v4405_v40 = vpop.permute.xlu1 %190  ;;  %v4407_v39 = vpop.permute.xlu0 %193  ;;  %v371_v1 = vsub.f32 %v4373_v16, %v4942_v33 }
  0xba   : > { %v381_v15 = vsub.f32 %v4376_v0, %v4974_v41  ;;  %3204 = vmatpush3.bf16.msra.mxu0 %v4096_v23  ;;  %3410 = vmatprep.subr.bf16.mxu1 %v4125_v31  ;;  %vm201_vm14 = vcmp.eq.s32.totalorder %v4405_v40, %v4210_v35  ;;  %vm202_vm15 = vcmp.eq.s32.totalorder %v4407_v39, %v4210_v35  ;;  %v4975_v58 = vand.u32 4294901760, %v4397_v5 }
  0xbb   : > { %3206 = vmatprep.subr.bf16.mxu0 %v4039_v4  ;;  %v2289_v41 = vsel %vm201_vm14, 1.0, %v4973_v50  ;;  %v2290_v23 = vsel %vm202_vm15, 1.0, %v4973_v50  ;;  %v372_v33 = vand.u32 4294901760, %v371_v1  ;;  %v4976_v9 = vand.u32 4294901760, %v4399_v10 }
  0xbc   : > { %v382_v49 = vand.u32 4294901760, %v381_v15  ;;  %3412 = vmatpush3.bf16.msra.mxu1 %v4125_v31  ;;  %v4433_v17 = vsub.f32 %v2289_v41, %v2289_v41  ;;  %v4435_v24 = vsub.f32 %v2290_v23, %v2290_v23  ;;  %v391_v38 = vsub.f32 %v4397_v5, %v4975_v58  ;;  %v4994_v23 = vld [vmem:[#allocation11_spill] sm:$0xff] }
  0xbd   : > { %v401_v55 = vsub.f32 %v4399_v10, %v4976_v9  ;;  %3414 = vmatprep.subr.bf16.mxu1 %v4163_v45  ;;  %2676 = vmatprep.mubr.f32.mxu0 %v372_v33  ;;  %v4992_v33 = vld [vmem:[#allocation10_spill] sm:$0xff] }
  0xbe   : > { %3208 = vmatpush3.bf16.msra.mxu0 %v4039_v4  ;;  %v392_v50 = vand.u32 4294901760, %v391_v38  ;;  %v410_v1 = vand.u32 4294901760, %v4433_v17  ;;  %v420_v15 = vand.u32 4294901760, %v4435_v24  ;;  %v4993_v58 = vand.u32 4294901760, %v4992_v33 }
  0xbf   : > { %3210 = vmatprep.subr.bf16.mxu0 %v4089_v54  ;;  %2677 = vmatmul.mubr.f32.gmra.mrb[2].mxu0 %v382_v49  ;;  %v402_v41 = vand.u32 4294901760, %v401_v55  ;;  %v4977_v49 = vmov 1.0   ;;  %v5016_v33 = vand.u32 4294901760, %v4376_v0 }
  0xc0   : > { %3416 = vmatpush3.bf16.msra.mxu1 %v4163_v45  ;;  %2679 = vmatprep.mubr.f32.mxu0 %v392_v50  ;;  %v411_v9 = vsub.f32 %v4433_v17, %v410_v1  ;;  %v421_v4 = vsub.f32 %v4435_v24, %v420_v15  ;;  %v4995_v50 = vand.u32 4294901760, %v4994_v23 }
  0xc1   : > { %3418 = vmatprep.subr.bf16.mxu1 %v4168_v61 }
  0xc2   : > { %3212 = vmatpush3.bf16.msra.mxu0 %v4089_v54  ;;  %v412_v38 = vand.u32 4294901760, %v411_v9  ;;  %v422_v55 = vand.u32 4294901760, %v421_v4  ;;  %v4978_v54 = vand.u32 4294901760, %v4228_v59  ;;  %v4996_v9 = vand.u32 4294901760, %v4252_v8 }
  0xc3   : > { %3214 = vmatprep.subr.bf16.mxu0 %v4099_v18  ;;  %2680 = vmatmul.mubr.f32.gmra.mrb[4].mxu0 %v402_v41  ;;  %v3305_v41 = vpack.c.bf16 %v4995_v50, %v4993_v58  ;;  %v5017_v58 = vld [vmem:[#allocation19_spill] sm:$0xff] }
  0xc4   : > { %3420 = vmatpush3.bf16.msra.mxu1 %v4168_v61  ;;  %2682 = vmatprep.mubr.f32.mxu0 %v412_v38  ;;  %v5000_v38 = vld [vmem:[#allocation13_spill] sm:$0xff]  ;;  %v5018_v23 = vand.u32 4294901760, %v5017_v58 }
  0xc5   : > { %3422 = vmatprep.subr.bf16.mxu1 %v4176_v25 }
  0xc6   : > { %3216 = vmatpush3.bf16.msra.mxu0 %v4099_v18  ;;  %v4979_v18 = vld [vmem:[#allocation9_spill] sm:$0xff] }
  0xc7   : > { %3218 = vmatprep.subr.bf16.mxu0 %v4125_v31  ;;  %2683 = vmatmul.mubr.f32.gmra.mrb[6].mxu0 %v422_v55  ;;  %v5001_v55 = vand.u32 4294901760, %v5000_v38 }
  0xc8   : > { %3424 = vmatpush3.bf16.msra.mxu1 %v4176_v25  ;;  %2717 = vmatprep.mubr.msk.f32.mxu0 %vm195_vm8, %v4977_v49 }
  0xc9   : > { %3426 = vmatprep.subr.bf16.mxu1 %v4180_v3 }
  0xca   : > { %3220 = vmatpush3.bf16.msra.mxu0 %v4125_v31  ;;  %v4980_v31 = vld [vmem:[#allocation14_spill] sm:$0xff] }
  0xcb   : > { %2982 = vmatmul.mubr.msk.f32.vlgmr.msra.gmra.mrb[0].mxu1 %vm244_vm2, %v4977_v49  ;;  %3222 = vmatprep.subr.bf16.mxu0 %v4163_v45 }
  0xcc   : > { %2984 = vmatprep.mubr.msk.f32.mxu1 %vm245_vm1, %v4977_v49  ;;  %3428 = vmatpush3.bf16.msra.mxu1 %v4180_v3 }
  0xcd   : > { %3430 = vmatprep.subr.bf16.mxu1 %v4184_v28 }
  0xce   : > { %3224 = vmatpush3.bf16.msra.mxu0 %v4163_v45  ;;  %v4981_v45 = vld [vmem:[#allocation5_spill] sm:$0xff] }
  0xcf   : > { %2985 = vmatmul.mubr.msk.f32.gmra.mrb[2].mxu1 %vm246_vm3, %v4977_v49  ;;  %3226 = vmatprep.subr.bf16.mxu0 %v4168_v61 }
  0xd0   : > { %2987 = vmatprep.mubr.msk.f32.mxu1 %vm247_vm4, %v4977_v49  ;;  %3432 = vmatpush3.bf16.msra.mxu1 %v4184_v28 }
  0xd1   : > { %3434 = vmatprep.subr.bf16.mxu1 %v4188_v2 }
  0xd2   : > { %3228 = vmatpush3.bf16.msra.mxu0 %v4168_v61  ;;  %v4982_v61 = vand.u32 4294901760, %v4981_v45  ;;  %v5002_v45 = vand.u32 4294901760, %v4280_v46 }
  0xd3   : > { %2988 = vmatmul.mubr.msk.f32.gmra.mrb[4].mxu1 %vm248_vm5, %v4977_v49  ;;  %3230 = vmatprep.subr.bf16.mxu0 %v4176_v25 }
  0xd4   : > { %2990 = vmatprep.mubr.msk.f32.mxu1 %vm249_vm6, %v4977_v49  ;;  %3436 = vmatpush3.bf16.msra.mxu1 %v4188_v2 }
  0xd5   : > { %3438 = vmatprep.subr.bf16.mxu1 %v4192_v7 }
  0xd6   : > { %3232 = vmatpush3.bf16.msra.mxu0 %v4176_v25  ;;  %v4983_v25 = vld [vmem:[#allocation6_spill] sm:$0xff] }
  0xd7   : > { %2991 = vmatmul.mubr.msk.f32.gmra.mrb[6].mxu1 %vm250_vm7, %v4977_v49  ;;  %3234 = vmatprep.subr.bf16.mxu0 %v4180_v3 }
  0xd8   : > { %3440 = vmatpush3.bf16.msra.mxu1 %v4192_v7  ;;  %3025 = vmatprep.mubr.f32.mxu1 %v4228_v59  ;;  %v4990_v59 = vand.u32 4294901760, %v4250_v29 }
  0xd9   : > { %2718 = vmatmul.mubr.msk.f32.vlgmr.msra.gmra.mrb[0].mxu0 %vm196_vm9, %v4977_v49  ;;  %3442 = vmatprep.subr.bf16.mxu1 %v4196_v30 }
  0xda   : > { %3236 = vmatpush3.bf16.msra.mxu0 %v4180_v3  ;;  %2720 = vmatprep.mubr.msk.f32.mxu0 %vm197_vm10, %v4977_v49  ;;  %v4984_v3 = vand.u32 4294901760, %v4983_v25  ;;  %v5006_v25 = vld [vmem:[#allocation16_spill] sm:$0xff] }
  0xdb   : > { %3238 = vmatprep.subr.bf16.mxu0 %v4184_v28 }
  0xdc   : > { %3444 = vmatpush3.bf16.msra.mxu1 %v4196_v30 }
  0xdd   : > { %3446 = vmatprep.subr.bf16.mxu1 %v4200_v37  ;;  %2721 = vmatmul.mubr.msk.f32.gmra.mrb[2].mxu0 %vm198_vm11, %v4977_v49 }
  0xde   : > { %3240 = vmatpush3.bf16.msra.mxu0 %v4184_v28  ;;  %2723 = vmatprep.mubr.msk.f32.mxu0 %vm199_vm12, %v4977_v49  ;;  %v3297_v28 = vpack.c.bf16 %v4984_v3, %v4982_v61  ;;  %v5007_v3 = vand.u32 4294901760, %v5006_v25 }
  0xdf   : > { %3242 = vmatprep.subr.bf16.mxu0 %v4188_v2 }
  0xe0   : > { %3448 = vmatpush3.bf16.msra.mxu1 %v4200_v37 }
  0xe1   : > { %3450 = vmatprep.subr.bf16.mxu1 %v4204_v13  ;;  %2724 = vmatmul.mubr.msk.f32.gmra.mrb[4].mxu0 %vm200_vm13, %v4977_v49 }
  0xe2   : > { %3244 = vmatpush3.bf16.msra.mxu0 %v4188_v2  ;;  %2726 = vmatprep.mubr.msk.f32.mxu0 %vm201_vm14, %v4977_v49  ;;  %v4985_v2 = vand.u32 4294901760, %v4342_v32 }
  0xe3   : > { %3246 = vmatprep.subr.bf16.mxu0 %v4192_v7 }
  0xe4   : > { %3452 = vmatpush3.bf16.msra.mxu1 %v4204_v13 }
  0xe5   : > { %3454 = vmatprep.subr.bf16.mxu1 %v4208_v34  ;;  %2727 = vmatmul.mubr.msk.f32.gmra.mrb[6].mxu0 %vm202_vm15, %v4977_v49 }
  0xe6   : > { %3248 = vmatpush3.bf16.msra.mxu0 %v4192_v7  ;;  %2761 = vmatprep.mubr.f32.mxu0 %v4342_v32  ;;  %v4986_v7 = vld [vmem:[#allocation7_spill] sm:$0xff]  ;;  %v4991_v32 = vand.u32 4294901760, %v4230_v44 }
  0xe7   : > { %3250 = vmatprep.subr.bf16.mxu0 %v4196_v30 }
  0xe8   : > { %3456 = vmatpush3.bf16.msra.mxu1 %v4208_v34 }
  0xe9   : > { %3458 = vmatprep.subr.bf16.mxu1 %v3847_v11 }
  0xea   : > { %3252 = vmatpush3.bf16.msra.mxu0 %v4196_v30  ;;  %v4987_v30 = vand.u32 4294901760, %v4986_v7  ;;  %v5008_v7 = vand.u32 4294901760, %v4308_v42 }
  0xeb   : > { %3026 = vmatmul.mubr.f32.vlgmr.msra.gmra.mrb[0].mxu1 %v4250_v29  ;;  %3254 = vmatprep.subr.bf16.mxu0 %v4200_v37  ;;  %v4997_v29 = vand.u32 4294901760, %v4278_v47 }
  0xec   : > { %3028 = vmatprep.mubr.f32.mxu1 %v4230_v44  ;;  %3460 = vmatpush3.bf16.msra.mxu1 %v3847_v11  ;;  %v4998_v44 = vld [vmem:[#allocation12_spill] sm:$0xff] }
  0xed   : > { %3462 = vmatprep.subr.bf16.mxu1 %v3851_v14  ;;  %v4999_v4 = vand.u32 4294901760, %v4998_v44 }
  0xee   : > { %3256 = vmatpush3.bf16.msra.mxu0 %v4200_v37  ;;  %v4988_v37 = vld [vmem:[#allocation8_spill] sm:$0xff] }
  0xef   : > { %3029 = vmatmul.mubr.f32.gmra.mrb[2].mxu1 %v4252_v8  ;;  %3258 = vmatprep.subr.bf16.mxu0 %v4204_v13  ;;  %v5003_v8 = vand.u32 4294901760, %v4306_v43 }
  0xf0   : > { %3031 = vmatprep.mubr.f32.mxu1 %v4278_v47  ;;  %3464 = vmatpush3.bf16.msra.mxu1 %v3851_v14  ;;  %v5004_v47 = vld [vmem:[#allocation15_spill] sm:$0xff] }
  0xf1   : > { %3466 = vmatprep.subr.bf16.mxu1 %v3883_v19  ;;  %v5005_v61 = vand.u32 4294901760, %v5004_v47 }
  0xf2   : > { %3260 = vmatpush3.bf16.msra.mxu0 %v4204_v13  ;;  %v4989_v13 = vand.u32 4294901760, %v4988_v37 }
  0xf3   : > { %3032 = vmatmul.mubr.f32.gmra.mrb[4].mxu1 %v4280_v46  ;;  %3262 = vmatprep.subr.bf16.mxu0 %v4208_v34 }
  0xf4   : > { %3034 = vmatprep.mubr.f32.mxu1 %v4306_v43  ;;  %3468 = vmatpush3.bf16.msra.mxu1 %v3883_v19  ;;  %v5010_v43 = vand.u32 4294901760, %v4344_v53 }
  0xf5   : > { %3470 = vmatprep.subr.bf16.mxu1 %v3913_v26 }
  0xf6   : > { %3264 = vmatpush3.bf16.msra.mxu0 %v4208_v34  ;;  %v3301_v34 = vpack.c.bf16 %v4989_v13, %v4987_v30  ;;  %v5011_v30 = vld [vmem:[#allocation17_spill] sm:$0xff]  ;;  %v5013_v13 = vld [vmem:[#allocation18_spill] sm:$0xff] }
  0xf7   : > { %3035 = vmatmul.mubr.f32.gmra.mrb[6].mxu1 %v4308_v42  ;;  %3266 = vmatprep.subr.bf16.mxu0 %v3847_v11  ;;  %v5012_v37 = vand.u32 4294901760, %v5011_v30  ;;  %v5015_v42 = vand.u32 4294901760, %v4373_v16 }
  0xf8   : > { %3472 = vmatpush3.bf16.msra.mxu1 %v3913_v26  ;;  %3069 = vmatprep.mubr.f32.mxu1 %v4978_v54  ;;  %v3309_v54 = vpack.c.bf16 %v5001_v55, %v4999_v4 }
  0xf9   : > { %2762 = vmatmul.mubr.f32.vlgmr.msra.gmra.mrb[0].mxu0 %v4344_v53  ;;  %3474 = vmatprep.subr.bf16.mxu1 %v3954_v36  ;;  %v5019_v53 = vld [vmem:[#allocation20_spill] sm:$0xff] }
  0xfa   : > { %3268 = vmatpush3.bf16.msra.mxu0 %v3847_v11  ;;  %2764 = vmatprep.mubr.f32.mxu0 %v4373_v16  ;;  %v5020_v50 = vand.u32 4294901760, %v5019_v53  ;;  %v5022_v16 = vand.u32 4294901760, %v4399_v10 }
  0xfb   : > { %3270 = vmatprep.subr.bf16.mxu0 %v3851_v14 }
  0xfc   : > { %3476 = vmatpush3.bf16.msra.mxu1 %v3954_v36 }
  0xfd   : > { %3478 = vmatprep.subr.bf16.mxu1 %v3986_v48  ;;  %2765 = vmatmul.mubr.f32.gmra.mrb[2].mxu0 %v4376_v0  ;;  %v5025_v0 = vld [vmem:[#allocation22_spill] sm:$0xff] }
  0xfe   : > { %3272 = vmatpush3.bf16.msra.mxu0 %v3851_v14  ;;  %2767 = vmatprep.mubr.f32.mxu0 %v4397_v5  ;;  %v5026_v4 = vand.u32 4294901760, %v5025_v0 }
  0xff   : > { %3274 = vmatprep.subr.bf16.mxu0 %v3883_v19 }
 0x100   : > { %3480 = vmatpush3.bf16.msra.mxu1 %v3986_v48 }
 0x101   : > { %3482 = vmatprep.subr.bf16.mxu1 %v4979_v18  ;;  %2768 = vmatmul.mubr.f32.gmra.mrb[4].mxu0 %v4399_v10 }
 0x102   : > { %3276 = vmatpush3.bf16.msra.mxu0 %v3883_v19  ;;  %2770 = vmatprep.mubr.f32.mxu0 %v4433_v17 }
 0x103   : > { %3278 = vmatprep.subr.bf16.mxu0 %v3913_v26 }
 0x104   : > { %3484 = vmatpush3.bf16.msra.mxu1 %v4979_v18 }
 0x105   : > { %3486 = vmatprep.subr.bf16.mxu1 %v4980_v31  ;;  %2771 = vmatmul.mubr.f32.gmra.mrb[6].mxu0 %v4435_v24 }
 0x106   : > { %3280 = vmatpush3.bf16.msra.mxu0 %v3913_v26  ;;  %2805 = vmatprep.mubr.f32.mxu0 %v4985_v2  ;;  %v3313_v2 = vpack.c.bf16 %v5007_v3, %v5005_v61 }
 0x107   : > { %3282 = vmatprep.subr.bf16.mxu0 %v3954_v36 }
 0x108   : > { %3488 = vmatpush3.bf16.msra.mxu1 %v4980_v31 }
 0x109   : > { %3490 = vmatprep.subr.bf16.mxu1 %v3297_v28 }
 0x10a   : > { %3284 = vmatpush3.bf16.msra.mxu0 %v3954_v36 }
 0x10b   : > { %3070 = vmatmul.mubr.f32.vlgmr.msra.gmra.mrb[0].mxu1 %v4990_v59  ;;  %3286 = vmatprep.subr.bf16.mxu0 %v3986_v48  ;;  %v5014_v59 = vand.u32 4294901760, %v5013_v13 }
 0x10c   : > { %3072 = vmatprep.mubr.f32.mxu1 %v4991_v32  ;;  %3492 = vmatpush3.bf16.msra.mxu1 %v3297_v28 }
 0x10d   : > { %3494 = vmatprep.subr.bf16.mxu1 %v3301_v34  ;;  %v3317_v32 = vpack.c.bf16 %v5014_v59, %v5012_v37 }
 0x10e   : > { %3288 = vmatpush3.bf16.msra.mxu0 %v3986_v48 }
 0x10f   : > { %3073 = vmatmul.mubr.f32.gmra.mrb[2].mxu1 %v4996_v9  ;;  %3290 = vmatprep.subr.bf16.mxu0 %v4979_v18  ;;  %v3321_v9 = vpack.c.bf16 %v5020_v50, %v5018_v23 }
 0x110   : > { %3075 = vmatprep.mubr.f32.mxu1 %v4997_v29  ;;  %3496 = vmatpush3.bf16.msra.mxu1 %v3301_v34  ;;  %v5021_v29 = vand.u32 4294901760, %v4397_v5 }
 0x111   : > { %3498 = vmatprep.subr.bf16.mxu1 %v3305_v41 }
 0x112   : > { %3292 = vmatpush3.bf16.msra.mxu0 %v4979_v18 }
 0x113   : > { %3076 = vmatmul.mubr.f32.gmra.mrb[4].mxu1 %v5002_v45  ;;  %3294 = vmatprep.subr.bf16.mxu0 %v4980_v31 }
 0x114   : > { %3078 = vmatprep.mubr.f32.mxu1 %v5003_v8  ;;  %3500 = vmatpush3.bf16.msra.mxu1 %v3305_v41 }
 0x115   : > { %3502 = vmatprep.subr.bf16.mxu1 %v3309_v54 }
 0x116   : > { %3296 = vmatpush3.bf16.msra.mxu0 %v4980_v31 }
 0x117   : > { %3079 = vmatmul.mubr.f32.gmra.mrb[6].mxu1 %v5008_v7  ;;  %3298 = vmatprep.subr.bf16.mxu0 %v3297_v28 }
 0x118   : > { %3504 = vmatpush3.bf16.msra.mxu1 %v3309_v54  ;;  %3113 = vmatprep.mubr.msk.f32.mxu1 %vm243_vm0, %v4977_v49 }
 0x119   : > { %2806 = vmatmul.mubr.f32.vlgmr.msra.gmra.mrb[0].mxu0 %v5010_v43  ;;  %3506 = vmatprep.subr.bf16.mxu1 %v3313_v2 }
 0x11a   : > { %3300 = vmatpush3.bf16.msra.mxu0 %v3297_v28  ;;  %2808 = vmatprep.mubr.f32.mxu0 %v5015_v42  ;;  %v5023_v28 = vld [vmem:[#allocation21_spill] sm:$0xff] }
 0x11b   : > { %3302 = vmatprep.subr.bf16.mxu0 %v3301_v34  ;;  %v5024_v44 = vand.u32 4294901760, %v5023_v28 }
 0x11c   : > { %3508 = vmatpush3.bf16.msra.mxu1 %v3313_v2 }
 0x11d   : > { %2809 = vmatmul.mubr.f32.gmra.mrb[2].mxu0 %v5016_v33  ;;  %3510 = vmatprep.subr.bf16.mxu1 %v3317_v32  ;;  %v3325_v38 = vpack.c.bf16 %v5026_v4, %v5024_v44 }
 0x11e   : > { %2811 = vmatprep.mubr.f32.mxu0 %v5021_v29  ;;  %3304 = vmatpush3.bf16.msra.mxu0 %v3301_v34 }
 0x11f   : > { %3306 = vmatprep.subr.bf16.mxu0 %v3305_v41 }
 0x120   : > { %3512 = vmatpush3.bf16.msra.mxu1 %v3317_v32 }
 0x121   : > { %2812 = vmatmul.mubr.f32.gmra.mrb[4].mxu0 %v5022_v16  ;;  %3514 = vmatprep.subr.bf16.mxu1 %v3321_v9 }
 0x122   : > { %2814 = vmatprep.mubr.f32.mxu0 %v410_v1  ;;  %3308 = vmatpush3.bf16.msra.mxu0 %v3305_v41 }
 0x123   : > { %3310 = vmatprep.subr.bf16.mxu0 %v3309_v54 }
 0x124   : > { %3516 = vmatpush3.bf16.msra.mxu1 %v3321_v9 }
 0x125   : > { %2815 = vmatmul.mubr.f32.gmra.mrb[6].mxu0 %v420_v15  ;;  %3518 = vmatprep.subr.bf16.mxu1 %v3325_v38 }
 0x126   : > { %3312 = vmatpush3.bf16.msra.mxu0 %v3309_v54  ;;  %2849 = vmatprep.mubr.msk.f32.mxu0 %vm195_vm8, %v4977_v49 }
 0x127   : > { %3314 = vmatprep.subr.bf16.mxu0 %v3313_v2 }
 0x128   : > { %3520 = vmatpush3.bf16.msra.mxu1 %v3325_v38 }
 0x129   : > { %3522 = vmatprep.subr.bf16.mxu1 %v3847_v11 }
 0x12a   : > { %3316 = vmatpush3.bf16.msra.mxu0 %v3313_v2 }
 0x12b   : > { %3114 = vmatmul.mubr.msk.f32.vlgmr.msra.gmra.mrb[0].mxu1 %vm244_vm2, %v4977_v49  ;;  %3318 = vmatprep.subr.bf16.mxu0 %v3317_v32 }
 0x12c   : > { %3116 = vmatprep.mubr.msk.f32.mxu1 %vm245_vm1, %v4977_v49  ;;  %3524 = vmatpush3.bf16.msra.mxu1 %v3847_v11 }
 0x12d   : > { %3526 = vmatprep.subr.bf16.mxu1 %v3851_v14 }
 0x12e   : > { %3320 = vmatpush3.bf16.msra.mxu0 %v3317_v32 }
 0x12f   : > { %3117 = vmatmul.mubr.msk.f32.gmra.mrb[2].mxu1 %vm246_vm3, %v4977_v49  ;;  %3322 = vmatprep.subr.bf16.mxu0 %v3321_v9 }
 0x130   : > { %3119 = vmatprep.mubr.msk.f32.mxu1 %vm247_vm4, %v4977_v49  ;;  %3528 = vmatpush3.bf16.msra.mxu1 %v3851_v14 }
 0x131   : > { %3530 = vmatprep.subr.bf16.mxu1 %v3883_v19 }
 0x132   : > { %3324 = vmatpush3.bf16.msra.mxu0 %v3321_v9 }
 0x133   : > { %3120 = vmatmul.mubr.msk.f32.gmra.mrb[4].mxu1 %vm248_vm5, %v4977_v49  ;;  %3326 = vmatprep.subr.bf16.mxu0 %v3325_v38 }
 0x134   : > { %3122 = vmatprep.mubr.msk.f32.mxu1 %vm249_vm6, %v4977_v49  ;;  %3532 = vmatpush3.bf16.msra.mxu1 %v3883_v19 }
 0x135   : > { %3534 = vmatprep.subr.bf16.mxu1 %v3913_v26 }
 0x136   : > { %3328 = vmatpush3.bf16.msra.mxu0 %v3325_v38 }
 0x137   : > { %3123 = vmatmul.mubr.msk.f32.gmra.mrb[6].mxu1 %vm250_vm7, %v4977_v49  ;;  %3330 = vmatprep.subr.bf16.mxu0 %v3847_v11 }
 0x138   : > { %3536 = vmatpush3.bf16.msra.mxu1 %v3913_v26  ;;  %3157 = vmatprep.mubr.msk.f32.mxu1 %vm243_vm0, %v4977_v49  ;;  %vm2183_vm0 = vcmask 523264  }
 0x139   : > { %2850 = vmatmul.mubr.msk.f32.vlgmr.msra.gmra.mrb[0].mxu0 %vm196_vm9, %v4977_v49  ;;  %3538 = vmatprep.subr.bf16.mxu1 %v3954_v36 }
 0x13a   : > { %2852 = vmatprep.mubr.msk.f32.mxu0 %vm197_vm10, %v4977_v49  ;;  %3332 = vmatpush3.bf16.msra.mxu0 %v3847_v11 }
 0x13b   : > { %3334 = vmatprep.subr.bf16.mxu0 %v3851_v14 }
 0x13c   : > { %3540 = vmatpush3.bf16.msra.mxu1 %v3954_v36 }
 0x13d   : > { %2853 = vmatmul.mubr.msk.f32.gmra.mrb[2].mxu0 %vm198_vm11, %v4977_v49  ;;  %3542 = vmatprep.subr.bf16.mxu1 %v3986_v48 }
 0x13e   : > { %2855 = vmatprep.mubr.msk.f32.mxu0 %vm199_vm12, %v4977_v49  ;;  %3336 = vmatpush3.bf16.msra.mxu0 %v3851_v14 }
 0x13f   : > { %3338 = vmatprep.subr.bf16.mxu0 %v3883_v19 }
 0x140   : > { %3544 = vmatpush3.bf16.msra.mxu1 %v3986_v48 }
 0x141   : > { %2856 = vmatmul.mubr.msk.f32.gmra.mrb[4].mxu0 %vm200_vm13, %v4977_v49  ;;  %3546 = vmatprep.subr.bf16.mxu1 %v4979_v18 }
 0x142   : > { %2858 = vmatprep.mubr.msk.f32.mxu0 %vm201_vm14, %v4977_v49  ;;  %3340 = vmatpush3.bf16.msra.mxu0 %v3883_v19 }
 0x143   : > { %3342 = vmatprep.subr.bf16.mxu0 %v3913_v26 }
 0x144   : > { %3548 = vmatpush3.bf16.msra.mxu1 %v4979_v18 }
 0x145   : > { %2859 = vmatmul.mubr.msk.f32.gmra.mrb[6].mxu0 %vm202_vm15, %v4977_v49  ;;  %3550 = vmatprep.subr.bf16.mxu1 %v4980_v31 }
 0x146   : > { %3344 = vmatpush3.bf16.msra.mxu0 %v3913_v26  ;;  %2893 = vmatprep.mubr.msk.f32.mxu0 %vm195_vm8, %v4977_v49 }
 0x147   : > { %3346 = vmatprep.subr.bf16.mxu0 %v3954_v36 }
 0x148   : > { %3552 = vmatpush3.bf16.msra.mxu1 %v4980_v31 }
 0x14a   : > { %3348 = vmatpush3.bf16.msra.mxu0 %v3954_v36 }
 0x14b   : > { %3158 = vmatmul.mubr.msk.f32.vlgmr.msra.gmra.mrb[0].mxu1 %vm244_vm2, %v4977_v49  ;;  %3350 = vmatprep.subr.bf16.mxu0 %v3986_v48 }
 0x14c   : > { %3160 = vmatprep.mubr.msk.f32.mxu1 %vm245_vm1, %v4977_v49 }
 0x14e   : > { %3352 = vmatpush3.bf16.msra.mxu0 %v3986_v48 }
 0x14f   : > { %3161 = vmatmul.mubr.msk.f32.gmra.mrb[2].mxu1 %vm246_vm3, %v4977_v49  ;;  %3354 = vmatprep.subr.bf16.mxu0 %v4979_v18 }
 0x150   : > { %3163 = vmatprep.mubr.msk.f32.mxu1 %vm247_vm4, %v4977_v49 }
 0x152   : > { %3356 = vmatpush3.bf16.msra.mxu0 %v4979_v18 }
 0x153   : > { %3164 = vmatmul.mubr.msk.f32.gmra.mrb[4].mxu1 %vm248_vm5, %v4977_v49  ;;  %3358 = vmatprep.subr.bf16.mxu0 %v4980_v31 }
 0x154   : > { %3166 = vmatprep.mubr.msk.f32.mxu1 %vm249_vm6, %v4977_v49 }
 0x156   : > { %3360 = vmatpush3.bf16.msra.mxu0 %v4980_v31 }
 0x157   : > { %3167 = vmatmul.mubr.msk.f32.gmra.mrb[6].mxu1 %vm250_vm7, %v4977_v49 }
 0x159   : > { %2894 = vmatmul.mubr.msk.f32.vlgmr.msra.gmra.mrb[0].mxu0 %vm196_vm9, %v4977_v49 }
 0x15a   : > { %2896 = vmatprep.mubr.msk.f32.mxu0 %vm197_vm10, %v4977_v49 }
 0x15d   : > { %2897 = vmatmul.mubr.msk.f32.gmra.mrb[2].mxu0 %vm198_vm11, %v4977_v49 }
 0x15e   : > { %2899 = vmatprep.mubr.msk.f32.mxu0 %vm199_vm12, %v4977_v49 }
 0x161   : > { %2900 = vmatmul.mubr.msk.f32.gmra.mrb[4].mxu0 %vm200_vm13, %v4977_v49 }
 0x162   : > { %2902 = vmatprep.mubr.msk.f32.mxu0 %vm201_vm14, %v4977_v49 }
 0x165   : > { %2903 = vmatmul.mubr.msk.f32.gmra.mrb[6].mxu0 %vm202_vm15, %v4977_v49 }
 0x21e   : > { %v3159_v11 = vpop.f32.mrb[0].mxu1 }
 0x21f   : > { %2161 = vrot.lane.b32.xlu0 %v3159_v11, %s3752_s17  ;;  %v2105_v14 = vpop.f32.mrb[1].mxu1 }
 0x220   : > { %2159 = vrot.lane.b32.xlu1 %v2105_v14, %s3752_s17 }
 0x222   : > { %v3162_v19 = vpop.f32.mrb[2].mxu1 }
 0x223   : > { %2165 = vrot.lane.b32.xlu0 %v3162_v19, %s3752_s17  ;;  %v2117_v26 = vpop.f32.mrb[3].mxu1 }
 0x224   : > { %2163 = vrot.lane.b32.xlu1 %v2117_v26, %s3752_s17 }
 0x226   : > { %v3165_v36 = vpop.f32.mrb[4].mxu1 }
 0x227   : > { %2169 = vrot.lane.b32.xlu0 %v3165_v36, %s3752_s17  ;;  %v2129_v40 = vpop.f32.mrb[5].mxu1 }
 0x228   : > { %2167 = vrot.lane.b32.xlu1 %v2129_v40, %s3752_s17 }
 0x22a   : > { %v3168_v48 = vpop.f32.mrb[6].mxu1 }
 0x22b   : > { %2173 = vrot.lane.b32.xlu0 %v3168_v48, %s3752_s17  ;;  %v2141_v51 = vpop.f32.mrb[7].mxu1 }
 0x22c   : > { %2171 = vrot.lane.b32.xlu1 %v2141_v51, %s3752_s17  ;;  %v2895_v39 = vpop.f32.mrb[0].mxu0 }
 0x22d   : > { %v1163_v52 = vpop.f32.mrb[1].mxu0 }
 0x230   : > { %v2898_v56 = vpop.f32.mrb[2].mxu0 }
 0x231   : > { %v1175_v57 = vpop.f32.mrb[3].mxu0 }
 0x234   : > { %v2901_v5 = vpop.f32.mrb[4].mxu0 }
 0x235   : > { %v1187_v6 = vpop.f32.mrb[5].mxu0 }
 0x238   : > { %v2904_v12 = vpop.f32.mrb[6].mxu0 }
 0x239   : > { %v1199_v22 = vpop.f32.mrb[7].mxu0 }
 0x291   : > { %v2162_v62 = vpop.permute.xlu0 %2161 }
 0x292   : > { %v2185_v63 = vsel %vm2183_vm0, %v2895_v39, %v2162_v62  ;;  %v2160_v21 = vpop.permute.xlu1 %2159 }
 0x293   : > { %2193 = vst [vmem:[%s137_s21 + $0x8] sm:$0xff] %v2185_v63  ;;  %v2184_v60 = vsel %vm2183_vm0, %v1163_v52, %v2160_v21 }
 0x294   : > { %2192 = vst [vmem:[%s137_s21] sm:$0xff] %v2184_v60 }
 0x295   : > { %v2166_v35 = vpop.permute.xlu0 %2165 }
 0x296   : > { %v2187_v17 = vsel %vm2183_vm0, %v2898_v56, %v2166_v35  ;;  %v2164_v20 = vpop.permute.xlu1 %2163 }
 0x297   : > { %2195 = vst [vmem:[%s137_s21 + $0x18] sm:$0xff] %v2187_v17  ;;  %v2186_v27 = vsel %vm2183_vm0, %v1175_v57, %v2164_v20 }
 0x298   : > { %2194 = vst [vmem:[%s137_s21 + $0x10] sm:$0xff] %v2186_v27 }
 0x299   : > { %v2170_v10 = vpop.permute.xlu0 %2169 }
 0x29a   : > { %v2189_v24 = vsel %vm2183_vm0, %v2901_v5, %v2170_v10  ;;  %v2168_v1 = vpop.permute.xlu1 %2167 }
 0x29b   : > { %2197 = vst [vmem:[%s137_s21 + $0x28] sm:$0xff] %v2189_v24  ;;  %v2188_v15 = vsel %vm2183_vm0, %v1187_v6, %v2168_v1 }
 0x29c   : > { %2196 = vst [vmem:[%s137_s21 + $0x20] sm:$0xff] %v2188_v15 }
 0x29d   : > { %v2174_v49 = vpop.permute.xlu0 %2173 }
 0x29e   : > { %v2191_v18 = vsel %vm2183_vm0, %v2904_v12, %v2174_v49  ;;  %v2172_v31 = vpop.permute.xlu1 %2171 }
 0x29f   : > { %2199 = vst [vmem:[%s137_s21 + $0x38] sm:$0xff] %v2191_v18  ;;  %v2190_v34 = vsel %vm2183_vm0, %v1199_v22, %v2172_v31 }
 0x2a0   : > { %2198 = vst [vmem:[%s137_s21 + $0x30] sm:$0xff] %v2190_v34 }
 0x2a1   : > { %3697 = shalt.err (!%p3694_p3)
}
 0x2a2   : > { %s3698_s5 = scalar_lea.hbm %s4847_s28, 1024  ;;  %s3702_s8 = scalar_lea.hbm %s4898_s2, 2048 }
 0x2a3   : > { %p3699_p4 = scmp.ne.s32.totalorder %s4847_s28, %s3698_s5  ;;  %p3703_p9 = scmp.lt.u32.totalorder %s4847_s28, %s4898_s2 }
 0x2a4   : > { %p3704_p10 = scmp.lt.u32.totalorder %s3702_s8, %s3698_s5  ;;  %p3706_p12 = scmp.lt.u32.totalorder %s3698_s5, %s4847_s28 }
 0x2a5   : > { %p3700_p7 = pnand %p3699_p4, %p3809_p5 }
 0x2a6   : > { %p3705_p11 = por %p3704_p10, %p3703_p9 }
 0x2a7   : > { %p3701_p8 = pneg %p3700_p7 }
 0x2a8   : > { %p3707_p13 = por %p3706_p12, %p3705_p11 }
 0x2aa   : > { %p3708_p0 = pnand %p3707_p13, %p3701_p8 }
 0x2ac   : > { %3711 = shalt.err (!%p3708_p0)
}
 0x2ad   : > { %s3754_s17 = smov 128   ;;  %s3755_s22 = smov 8  }
 0x2ae   : > { %3633 = dma.vmem_to_hbm [thread:$0]  (%p3809_p5), %s4849_s25, 1024, %s4847_s28, %s4855_s13, %s3754_s17, %s3754_s17, %s3755_s22  }
 0x2af PF: > { %p3639_p1 = scmp.ge.s32.totalorder %s3746_s12, 2  ;;  %s2229_s23 = sand.u32 1, %s3734_s9  }
 0x2b0   : > { %s2230_s21 = scalar_lea.sflag [#allocation3], %s2229_s23 }
 0x2b1   : > { %p3636_p2 = pnand %p3639_p1, %p3813_p6 }
 0x2b3   : > { %3729 = dma.done.wait (!%p3636_p2), %s2230_s21, 1024  }
 0x2b4   : > { %3731 = vsyncadd (!%p3636_p2), %s2230_s21, 4294966272  ;;  %p12_p3 = scmp.ge.s32.totalorder %s3796_s15, 4   ;;  %s5027_s9 = smov %s3738_s10 }
 0x2b5   : > { %s5028_s10 = smov %s3742_s11  ;;  %s5029_s11 = smov %s3807_s18 }
 0x2b6   : > { %s5030_s12 = smov %s3796_s15  ;;  %14 = sbr.rel (!%p12_p3) target bundleno = 3 (0x3), region = 63 }
 0x2bd   :  { %2235 = vsyncpa [#allocation3], 1 }
 0x2be   :  { %2237 = vsyncpa [#allocation3 + $0x1], 1 }

</bundles_post_ra>
